<compile_context>
chip_gen: v6e
topology: v6e:2x2x1
jax: 0.10.0
libtpu: 0.0.40
codegen_flags: <defaults>
</compile_context>

<pallas_src>
import jax
import jax.numpy as jnp
from jax.experimental import pallas as pl
from jax.experimental.pallas import tpu as pltpu


def _attention_kernel(x_ref, w_ref, ws_ref, aw_ref):
    # x_ref  : (Bb, T, H) slab of gru_output for this grid step (storage dtype)
    # w_ref  : (1, H)     linear-layer weight (shared across the grid)
    # ws_ref : (Bb, H)    weighted-sum output block (lane-dense in H)
    # aw_ref : (Bb, T)    attention-weights output block (lane-dense in T)
    x = x_ref[...]                                   # keep storage dtype (no bulk upcast)
    w = w_ref[...]                                   # (1, H)

    # Linear(H -> 1, bias=False): lane reduction over H with f32 accumulation
    # on the (Bb, T) result only.
    scores = jnp.sum(x * w[None, :, :], axis=-1, dtype=jnp.float32)   # (Bb, T)

    # Numerically stable softmax over the sequence (lane) axis, in f32.
    m = jnp.max(scores, axis=-1, keepdims=True)                       # (Bb, 1)
    e = jnp.exp(scores - m)                                           # (Bb, T)
    denom = jnp.sum(e, axis=-1, keepdims=True)                        # (Bb, 1)
    # approx=False is the exact divide path (approx=True = EUP vrcp, ~1e-3 err).
    inv = pl.reciprocal(denom, approx=False)
    weights = e * inv                                                 # (Bb, T) f32

    # Weighted sum over T as a batched MXU contraction: (Bb,1,T) @ (Bb,T,H).
    # Operands stay in storage dtype; accumulation is f32.
    ws = jnp.einsum(
        "bqt,bth->bqh",
        weights[:, None, :].astype(x.dtype), x,
        preferred_element_type=jnp.float32,
    )[:, 0, :]                                                        # (Bb, H) f32

    ws_ref[...] = ws.astype(ws_ref.dtype)
    aw_ref[...] = weights.astype(aw_ref.dtype)


def _tpu_budgets():
    """Per-generation (slab_budget_bytes, vmem_limit_bytes, tensorcores_per_chip)."""
    kind = ""
    try:
        kind = jax.devices()[0].device_kind.lower()
    except Exception:
        pass
    if "v7" in kind:
        # v7x: 64 MiB VMEM per TensorCore, 2 TensorCores share the grid.
        return 40 << 20, 48 << 20, 2
    # v5e / v6e: 128 MiB physical VMEM, 1 TensorCore per chip.
    # (v5e scoped default is only 16 MiB, so an explicit limit is mandatory.)
    return 64 << 20, 80 << 20, 1


def attention_forward(gru_output, weight, *, block_b=1024):
    """gru_output: (B, T, H); weight: (1, H) (nn.Linear(H, 1, bias=False).weight).

    Returns (weighted_sum (B, H), attention_weights (B, T, 1)).
    """
    B, T, H = gru_output.shape
    dtype = gru_output.dtype
    in_sz = jnp.dtype(dtype).itemsize
    out_sz = in_sz  # outputs stored in the input dtype

    vmem_budget, vmem_limit, num_tc = _tpu_budgets()

    # Per-batch-row VMEM footprint:
    #   2x double-buffered input slab row
    # + one transient f32 row for the f32-accumulated score reduction
    # + 2x double-buffered output rows (H for ws, T for aw)
    # + f32 softmax transients (scores / exp / weights / ws row)
    per_row = (2 * T * H * in_sz
               + T * H * 4
               + 2 * (H + T) * out_sz
               + 4 * T * 4 + 2 * H * 4)
    fixed = 2 * H * in_sz + (1 << 20)  # double-buffered weight + slack

    # --- choose the batch block size bb ------------------------------------
    bb = min(block_b, B)
    bb = min(bb, max(1, (vmem_budget - fixed) // per_row))
    # Only split the batch for parallelism when the chip has 2 TensorCores.
    if num_tc >= 2 and B >= 16:
        bb = min(bb, max(8, -(-B // 2)))
    # Sublane-aligned batch block: multiple of 8, minimum 8.
    bb = max(8, (bb // 8) * 8)
    n_blocks = pl.cdiv(B, bb)
    # v7x: prefer an even block count so neither TensorCore idles on a tail step.
    if num_tc >= 2:
        while n_blocks > 1 and n_blocks % 2 == 1 and bb > 8:
            bb -= 8
            n_blocks = pl.cdiv(B, bb)

    b_padded = n_blocks * bb
    x = gru_output
    if b_padded != B:
        # Zero-padded rows give uniform (finite) softmax rows; sliced off below.
        x = jnp.pad(x, ((0, b_padded - B), (0, 0), (0, 0)))

    # TODO(synk): for extreme T*H where even bb=8 overflows the VMEM budget,
    # add a second "arbitrary" grid axis over T with online-softmax
    # accumulators instead of shrinking bb below 8.

    out_shapes = (
        jax.ShapeDtypeStruct((b_padded, H), dtype),   # weighted sum
        jax.ShapeDtypeStruct((b_padded, T), dtype),   # attention weights (lane-dense)
    )
    grid_spec = pltpu.PrefetchScalarGridSpec(
        num_scalar_prefetch=0,
        grid=(n_blocks,),
        in_specs=[
            pl.BlockSpec((bb, T, H), lambda b: (b, 0, 0)),   # batch slab of x
            pl.BlockSpec((1, H), lambda b: (0, 0)),          # shared weight
        ],
        out_specs=[
            pl.BlockSpec((bb, H), lambda b: (b, 0)),
            pl.BlockSpec((bb, T), lambda b: (b, 0)),
        ],
    )
    ws, aw = pl.pallas_call(
        _attention_kernel,
        out_shape=out_shapes,
        grid_spec=grid_spec,
        compiler_params=pltpu.CompilerParams(
            dimension_semantics=("parallel",),
            vmem_limit_bytes=int(vmem_limit),
        ),
    )(x, weight)

    # Free layout plumbing in the wrapper: drop padding, restore (B, T, 1).
    return ws[:B], aw[:B][..., None]


def _reference(gru_output, weight):
    scores = jnp.einsum("bth,oh->bto", gru_output, weight)[..., 0]   # (B, T)
    w = jax.nn.softmax(scores, axis=1)[..., None]                    # (B, T, 1)
    return jnp.sum(w * gru_output, axis=1), w


if __name__ == "__main__":
    B, T, H = 2, 8, 32
    key = jax.random.PRNGKey(0)
    kx, kw = jax.random.split(key)
    gru_output = jax.random.normal(kx, (B, T, H), dtype=jnp.float32)
    # nn.Linear(hidden_size, 1, bias=False) -> weight shape (1, hidden_size)
    bound = 1.0 / (H ** 0.5)
    weight = jax.random.uniform(kw, (1, H), minval=-bound, maxval=bound,
                                dtype=jnp.float32)

    weighted_sum, attn_weights = attention_forward(gru_output, weight)
    jax.block_until_ready((weighted_sum, attn_weights))

    ref_ws, ref_aw = _reference(gru_output, weight)
    assert weighted_sum.shape == (B, H)
    assert attn_weights.shape == (B, T, 1)
    assert jnp.allclose(weighted_sum, ref_ws, atol=1e-5, rtol=1e-5)
    assert jnp.allclose(attn_weights, ref_aw, atol=1e-5, rtol=1e-5)

    print("KERNEL_OK")
</pallas_src>

<mosaic_0001>
module attributes {stable_mosaic.version = 11 : i64} {
  func.func @_attention_kernel(%arg0: i32, %arg1: memref<8x8x32xf32, #tpu.memory_space<vmem>>, %arg2: memref<1x32xf32, #tpu.memory_space<vmem>>, %arg3: memref<8x32xf32, #tpu.memory_space<vmem>>, %arg4: memref<8x8xf32, #tpu.memory_space<vmem>>) attributes {dimension_semantics = [#tpu.dimension_semantics<parallel>], iteration_bounds = array<i64: 1>, scalar_prefetch = 0 : i64, scratch_operands = 0 : i64, tpu.core_type = #tpu.core_type<tc>, window_params = [{transform_indices = @transform_0, window_bounds = array<i64: 8, 8, 32>}, {pipeline_mode = #tpu.pipeline_mode<synchronous>, transform_indices = @transform_1, window_bounds = array<i64: 1, 32>}, {transform_indices = @transform_2, window_bounds = array<i64: 8, 32>}, {transform_indices = @transform_3, window_bounds = array<i64: 8, 8>}]} {
    %c0 = arith.constant 0 : index
    %c0_0 = arith.constant 0 : index
    %c0_1 = arith.constant 0 : index
    %0 = vector.load %arg1[%c0, %c0_0, %c0_1] : memref<8x8x32xf32, #tpu.memory_space<vmem>>, vector<8x8x32xf32>
    %c0_2 = arith.constant 0 : index
    %c0_3 = arith.constant 0 : index
    %1 = vector.load %arg2[%c0_2, %c0_3] : memref<1x32xf32, #tpu.memory_space<vmem>>, vector<1x32xf32>
    %2 = vector.shape_cast %1 : vector<1x32xf32> to vector<1x1x32xf32>
    %3 = vector.broadcast %2 : vector<1x1x32xf32> to vector<8x8x32xf32>
    %4 = arith.mulf %0, %3 : vector<8x8x32xf32>
    %cst = arith.constant dense<0.000000e+00> : vector<8x8xf32>
    %5 = vector.multi_reduction <add>, %4, %cst [2] : vector<8x8x32xf32> to vector<8x8xf32>
    %cst_4 = arith.constant dense<0xFF800000> : vector<8xf32>
    %6 = vector.multi_reduction <maximumf>, %5, %cst_4 [1] : vector<8x8xf32> to vector<8xf32>
    %7 = vector.shape_cast %6 : vector<8xf32> to vector<8x1xf32>
    %8 = vector.broadcast %7 : vector<8x1xf32> to vector<8x8xf32>
    %9 = arith.subf %5, %8 : vector<8x8xf32>
    %10 = math.exp %9 : vector<8x8xf32>
    %cst_5 = arith.constant dense<0.000000e+00> : vector<8xf32>
    %11 = vector.multi_reduction <add>, %10, %cst_5 [1] : vector<8x8xf32> to vector<8xf32>
    %12 = vector.shape_cast %11 : vector<8xf32> to vector<8x1xf32>
    %13 = tpu.reciprocal %12 : vector<8x1xf32> -> vector<8x1xf32>
    %14 = vector.broadcast %13 : vector<8x1xf32> to vector<8x8xf32>
    %15 = arith.mulf %10, %14 : vector<8x8xf32>
    %16 = vector.shape_cast %15 : vector<8x8xf32> to vector<8x1x8xf32>
    "tpu.trace_start"() <{level = 10 : i32, message = "bqt,bth->bqh"}> : () -> ()
    %cst_6 = arith.constant dense<0.000000e+00> : vector<8x1x32xf32>
    %17 = tpu.matmul %16, %0, %cst_6 {dimension_numbers = #tpu.dot_dimension_numbers<[2], [1], [1], [2], [0, 0, 0, 1, 1, 2], [0], [0]>} : vector<8x1x8xf32>, vector<8x8x32xf32>, vector<8x1x32xf32> -> vector<8x1x32xf32>
    "tpu.trace_stop"() : () -> ()
    %18 = vector.shape_cast %17 : vector<8x1x32xf32> to vector<8x32xf32>
    %c0_7 = arith.constant 0 : index
    %c0_8 = arith.constant 0 : index
    %19 = vector.load %arg3[%c0_7, %c0_8] : memref<8x32xf32, #tpu.memory_space<vmem>>, vector<8x32xf32>
    tpu.vector_store %arg3[%c0_7, %c0_8], %18 {strides = array<i32>} : memref<8x32xf32, #tpu.memory_space<vmem>>, vector<8x32xf32>,
    %c0_9 = arith.constant 0 : index
    %c0_10 = arith.constant 0 : index
    %20 = vector.load %arg4[%c0_9, %c0_10] : memref<8x8xf32, #tpu.memory_space<vmem>>, vector<8x8xf32>
    tpu.vector_store %arg4[%c0_9, %c0_10], %15 {strides = array<i32>} : memref<8x8xf32, #tpu.memory_space<vmem>>, vector<8x8xf32>,
    return
  }
  func.func @transform_0(%arg0: i32) -> (i32, i32, i32) {
    %c0_i32 = arith.constant 0 : i32
    %c0_i32_0 = arith.constant 0 : i32
    %c0_i32_1 = arith.constant 0 : i32
    return %arg0, %c0_i32, %c0_i32_0 : i32, i32, i32
  }
  func.func @transform_1(%arg0: i32) -> (i32, i32) {
    %c0_i32 = arith.constant 0 : i32
    %c0_i32_0 = arith.constant 0 : i32
    %c0_i32_1 = arith.constant 0 : i32
    return %c0_i32, %c0_i32_0 : i32, i32
  }
  func.func @transform_2(%arg0: i32) -> (i32, i32) {
    %c0_i32 = arith.constant 0 : i32
    %c0_i32_0 = arith.constant 0 : i32
    return %arg0, %c0_i32 : i32, i32
  }
  func.func @transform_3(%arg0: i32) -> (i32, i32) {
    %c0_i32 = arith.constant 0 : i32
    %c0_i32_0 = arith.constant 0 : i32
    return %arg0, %c0_i32 : i32, i32
  }
}

</mosaic_0001>

<bundles_post_ra>
// kernel: tpu_custom_call.1
= control target key start
LH: loop header
LB: loop body
LE: loop exit
PB: predicated region body
PF: predicated region fallthrough
CT: control target
= control target key end

     0   :  { %9 = vsyncpa [#allocation3], 0  ;;  %s1402_s0 = inlined_call_operand.hbm [shape: f32[8,8,32], index: 0, kind: input, shape index: {}]   ;;  %s1403_s1 = inlined_call_operand.vmem [shape: f32[1,32], index: 1, kind: input, shape index: {}]   ;;  %s1404_s2 = inlined_call_operand.hbm [shape: f32[8,32], index: 2, kind: output, shape index: {0}]   ;;  %s1405_s3 = inlined_call_operand.hbm [shape: f32[8,8], index: 3, kind: output, shape index: {1}]  }
   0x1   :  { %10 = vsyncpa [#allocation4], 0 }
   0x2   :  { %11 = vsyncpa [#allocation7], 0  ;;  %s1189_s12 = smov [#allocation2]  }
   0x3   :  { %s17_s13 = sshll.u32 %s1189_s12, 4  ;;  %s18_s13 = int_to_ptr.vmem [resolvable:$true] %s17_s13 }
   0x4   :  { %s1131_s14 = scalar_lea.vmem %s18_s13, 1024  ;;  %p1136_p1 = scmp.lt.s32.totalorder %s18_s13, %s18_s13 }
   0x5   :  { %p1132_p0 = scmp.ne.s32.totalorder %s18_s13, %s1131_s14  ;;  %p1137_p2 = scmp.lt.s32.totalorder %s1131_s14, %s1131_s14 }
   0x7   :  { %p1138_p3 = por %p1137_p2, %p1136_p1 }
   0x9   :  { %p1139_p4 = pnand %p1138_p3, %p1132_p0 }
   0xb   :  { %1142 = shalt.err (!%p1139_p4)
}
   0xc   :  { %s1190_s15 = smov 128   ;;  %s1191_s16 = smov 8  }
   0xd   :  { %23 = dma.hbm_to_vmem [thread:$0]  %s1402_s0, 1024, %s18_s13, [#allocation3], %s1190_s15, %s1190_s15, %s1191_s16  }
   0xe   :  { %1183 = dma.done.wait [#allocation3], 1024  }
   0xf   :  { %1184 = vsyncadd [#allocation3], 4294966272  ;;  %v1220_v0 = vld [vmem:[#allocation2] sm:$0xff]  ;;  %vm52_vm0 = vcmask 261120   ;;  %v1225_v2 = vld [vmem:[#allocation2 + $0x10] sm:$0xff]  ;;  %v85_v25 = vlaneseq  ;;  %vm119_vm1 = vcmask 1041409  }
  0x10   :  { %v1030_v1 = vld [vmem:[%s1403_s1] ss:$0 sm:$0xff]  ;;  %v1229_v5 = vld [vmem:[#allocation2 + $0x8] sm:$0xff]  ;;  %v1231_v6 = vld [vmem:[#allocation2 + $0x18] sm:$0xff]  ;;  %vm121_vm2 = vcmask 1042434   ;;  %vm123_vm3 = vcmask 1043459  }
  0x11   :  { %v44_v3 = vmul.f32 %v1030_v1, %v1220_v0  ;;  %v46_v4 = vmul.f32 %v1030_v1, %v1225_v2  ;;  %v45_v7 = vmul.f32 %v1030_v1, %v1229_v5  ;;  %v47_v8 = vmul.f32 %v1030_v1, %v1231_v6  ;;  %v1235_v9 = vld [vmem:[#allocation2 + $0x20] sm:$0xff]  ;;  %v1237_v10 = vld [vmem:[#allocation2 + $0x28] sm:$0xff]  ;;  %v1245_v17 = vld [vmem:[#allocation2 + $0x30] sm:$0xff]  ;;  %s1195_s0 = smov [#allocation6]  }
  0x12   :  { %v48_v15 = vmul.f32 %v1030_v1, %v1235_v9  ;;  %v49_v16 = vmul.f32 %v1030_v1, %v1237_v10  ;;  %v1247_v18 = vld [vmem:[#allocation2 + $0x38] sm:$0xff]  ;;  %v50_v21 = vmul.f32 %v1030_v1, %v1245_v17  ;;  %v86_v26 = vand.u32 127, %v85_v25  ;;  %s1017_s1 = sshll.u32 %s1195_s0, 4  ;;  %s1018_s1 = int_to_ptr.vmem [resolvable:$true] %s1017_s1 }
  0x13   :  { %v53_v11 = vsel %vm52_vm0, %v44_v3, 0.0  ;;  %v59_v12 = vsel %vm52_vm0, %v46_v4, 0.0  ;;  %v56_v13 = vsel %vm52_vm0, %v45_v7, 0.0  ;;  %v62_v14 = vsel %vm52_vm0, %v47_v8, 0.0  ;;  %s1143_s21 = scalar_lea.vmem %s1018_s1, 128  ;;  %p1148_p6 = scmp.lt.s32.totalorder %s1018_s1, %s1018_s1 }
  0x14   :  { %54 = vadd.xlane.f32.xlu0 %v53_v11  ;;  %60 = vadd.xlane.f32.xlu1 %v59_v12  ;;  %v65_v19 = vsel %vm52_vm0, %v48_v15, 0.0  ;;  %v68_v20 = vsel %vm52_vm0, %v49_v16, 0.0  ;;  %v51_v22 = vmul.f32 %v1030_v1, %v1247_v18  ;;  %v71_v23 = vsel %vm52_vm0, %v50_v21, 0.0  ;;  %p1144_p5 = scmp.ne.s32.totalorder %s1018_s1, %s1143_s21  ;;  %p1149_p7 = scmp.lt.s32.totalorder %s1143_s21, %s1143_s21 }
  0x15   :  { %v1255_v27 = vshrl.u32 %v85_v25, 7  ;;  %vm125_vm4 = vcmask 1044484   ;;  %vm127_vm5 = vcmask 1045509   ;;  %vm129_vm6 = vcmask 1046534  }
  0x16   :  { %v74_v24 = vsel %vm52_vm0, %v51_v22, 0.0  ;;  %vm131_vm7 = vcmask 1047559   ;;  %vm134_vm8 = vcmask 64512   ;;  %v1192_v53 = vmov 0   ;;  %p1150_p8 = por %p1149_p7, %p1148_p6 }
  0x17   :  { %v1258_v30 = vsub.s32 %v86_v26, %v1255_v27  ;;  %1104 = vset.pattern.permute.xlu0 %v1192_v53  ;;  %1103 = vset.pattern.permute.xlu1 %v1192_v53  ;;  %v141_v54 = vsub.s32 0, %v1255_v27  ;;  %v145_v55 = vsub.s32 1, %v1255_v27  ;;  %v149_v56 = vsub.s32 2, %v1255_v27 }
  0x18   :  { %57 = vadd.xlane.f32.xlu0 %v56_v13  ;;  %63 = vadd.xlane.f32.xlu1 %v62_v14  ;;  %v153_v57 = vsub.s32 3, %v1255_v27  ;;  %v157_v62 = vsub.s32 4, %v1255_v27  ;;  %v161_v11 = vsub.s32 5, %v1255_v27  ;;  %v165_v15 = vsub.s32 6, %v1255_v27  ;;  %p1151_p9 = pnand %p1150_p8, %p1144_p5 }
  0x19   :  { %v169_v21 = vsub.s32 7, %v1255_v27  ;;  %vm1194_vm9 = vmmov 0  }
  0x1c   :  { %66 = vadd.xlane.f32.xlu0 %v65_v19  ;;  %69 = vadd.xlane.f32.xlu1 %v68_v20 }
  0x20   :  { %72 = vadd.xlane.f32.xlu0 %v71_v23  ;;  %75 = vadd.xlane.f32.xlu1 %v74_v24 }
  0x9d   :  { %v55_v28 = vpop.xlane.xlu0 %54  ;;  %v61_v29 = vpop.xlane.xlu1 %60 }
  0x9e   :  { %v90_v33 = vrot.slane %v55_v28, %v1258_v30  ;;  %v98_v36 = vrot.slane %v61_v29, %v1258_v30 }
  0xa1   :  { %v58_v31 = vpop.xlane.xlu0 %57  ;;  %v64_v32 = vpop.xlane.xlu1 %63 }
  0xa2   :  { %v94_v34 = vrot.slane %v58_v31, %v1258_v30  ;;  %v102_v35 = vrot.slane %v64_v32, %v1258_v30 }
  0xa4   :  { %v120_v37 = vsel %vm119_vm1, %v94_v34, %v90_v33 }
  0xa5   :  { %v122_v38 = vsel %vm121_vm2, %v98_v36, %v120_v37  ;;  %v67_v39 = vpop.xlane.xlu0 %66  ;;  %v70_v40 = vpop.xlane.xlu1 %69 }
  0xa6   :  { %v124_v41 = vsel %vm123_vm3, %v102_v35, %v122_v38  ;;  %v106_v42 = vrot.slane %v67_v39, %v1258_v30  ;;  %v110_v43 = vrot.slane %v70_v40, %v1258_v30 }
  0xa8   :  { %v126_v44 = vsel %vm125_vm4, %v106_v42, %v124_v41 }
  0xa9   :  { %v73_v45 = vpop.xlane.xlu0 %72  ;;  %v76_v46 = vpop.xlane.xlu1 %75  ;;  %v128_v49 = vsel %vm127_vm5, %v110_v43, %v126_v44 }
  0xaa   :  { %v114_v47 = vrot.slane %v73_v45, %v1258_v30  ;;  %v118_v48 = vrot.slane %v76_v46, %v1258_v30 }
  0xac   :  { %v130_v50 = vsel %vm129_vm6, %v114_v47, %v128_v49 }
  0xad   :  { %v132_v51 = vsel %vm131_vm7, %v118_v48, %v130_v50 }
  0xae   :  { %v135_v52 = vsel %vm134_vm8, %v132_v51, -inf }
  0xaf   :  { %136 = vmax.xlane.f32.xlu0 %v135_v52 }
 0x138   :  { %v137_v58 = vpop.xlane.xlu0 %136 }
 0x139   :  { %v142_v59 = vrot.slane %v137_v58, %v141_v54  ;;  %v146_v60 = vrot.slane %v137_v58, %v145_v55  ;;  %v150_v61 = vrot.slane %v137_v58, %v149_v56  ;;  %v154_v63 = vrot.slane %v137_v58, %v153_v57 }
 0x13a   :  { %v158_v12 = vrot.slane %v137_v58, %v157_v62  ;;  %v162_v16 = vrot.slane %v137_v58, %v161_v11  ;;  %v166_v22 = vrot.slane %v137_v58, %v165_v15  ;;  %v170_v25 = vrot.slane %v137_v58, %v169_v21 }
 0x13b   :  { %v179_v1 = vsub.f32 %v55_v28, %v142_v59  ;;  %v180_v3 = vsub.f32 %v58_v31, %v146_v60  ;;  %v181_v4 = vsub.f32 %v61_v29, %v150_v61  ;;  %v182_v13 = vsub.f32 %v64_v32, %v154_v63 }
 0x13c   :  { %v183_v19 = vsub.f32 %v67_v39, %v158_v12  ;;  %v184_v23 = vsub.f32 %v70_v40, %v162_v16  ;;  %v185_v26 = vsub.f32 %v73_v45, %v166_v22  ;;  %v186_v32 = vsub.f32 %v76_v46, %v170_v25 }
 0x13d   :  { %v187_v7 = vmul.f32 1.442695, %v179_v1  ;;  %v189_v8 = vmul.f32 1.442695, %v180_v3  ;;  %v191_v14 = vmul.f32 1.442695, %v181_v4 }
 0x13e   :  { %v193_v20 = vmul.f32 1.442695, %v182_v13  ;;  %v195_v24 = vmul.f32 1.442695, %v183_v19  ;;  %v197_v28 = vmul.f32 1.442695, %v184_v23 }
 0x13f   :  { %1105 = vpow2.f32 %v187_v7  ;;  %v199_v33 = vmul.f32 1.442695, %v185_v26  ;;  %v201_v35 = vmul.f32 1.442695, %v186_v32  ;;  %v1193_v22 = vmov 0.0  }
 0x140   :  { %1107 = vpow2.f32 %v189_v8  ;;  %1055 = vmatprep.subr.mxu0 %v1193_v22  ;;  %1057 = vmatprep.mubr.msk.f32.mxu0 %vm1194_vm9, %v1193_v22 }
 0x141   :  { %1109 = vpow2.f32 %v191_v14  ;;  %1056 = vmatpush3.msra.mxu0 %v1220_v0  ;;  %1060 = vmatprep.subr.mxu1 %v1193_v22 }
 0x142   :  { %1111 = vpow2.f32 %v193_v20  ;;  %1061 = vmatpush3.msra.mxu1 %v1229_v5  ;;  %1062 = vmatprep.mubr.msk.f32.mxu1 %vm1194_vm9, %v1193_v22 }
 0x143   :  { %1113 = vpow2.f32 %v195_v24  ;;  %1065 = vmatprep.subr.mxu0 %v1193_v22  ;;  %1070 = vmatprep.subr.mxu1 %v1193_v22 }
 0x144   :  { %1115 = vpow2.f32 %v197_v28 }
 0x145   :  { %1117 = vpow2.f32 %v199_v33 }
 0x146   :  { %1119 = vpow2.f32 %v201_v35 }
 0x14c   :  { %v1106_v29 = vpop.eup %1105 }
 0x14d   :  { %v1108_v31 = vpop.eup %1107  ;;  %212 = vperm.xlu1 %1103, %v1106_v29  }
 0x14e   :  { %215 = vperm.xlu0 %1104, %v1108_v31   ;;  %v1110_v34 = vpop.eup %1109 }
 0x14f   :  { %v1112_v36 = vpop.eup %1111 }
 0x150   :  { %v1114_v37 = vpop.eup %1113 }
 0x151   :  { %218 = vperm.xlu1 %1103, %v1110_v34   ;;  %v1116_v38 = vpop.eup %1115 }
 0x152   :  { %v1118_v39 = vpop.eup %1117 }
 0x153   :  { %v1120_v40 = vpop.eup %1119 }
 0x155   :  { %221 = vperm.xlu1 %1103, %v1112_v36  }
 0x159   :  { %224 = vperm.xlu1 %1103, %v1114_v37  }
 0x15d   :  { %227 = vperm.xlu1 %1103, %v1116_v38  }
 0x161   :  { %230 = vperm.xlu1 %1103, %v1118_v39  }
 0x165   :  { %233 = vperm.xlu1 %1103, %v1120_v40  }
 0x1c8   :  { %v213_v41 = vpop.permute.xlu1 %212 }
 0x1c9   :  { %v216_v45 = vpop.permute.xlu0 %215  ;;  %v238_v48 = vrot.slane %v213_v41, %v1258_v30 }
 0x1ca   :  { %v242_v47 = vrot.slane %v216_v45, %v1258_v30 }
 0x1cc   :  { %v219_v42 = vpop.permute.xlu1 %218  ;;  %v267_v53 = vsel %vm119_vm1, %v242_v47, %v238_v48 }
 0x1cd   :  { %v246_v49 = vrot.slane %v219_v42, %v1258_v30 }
 0x1cf   :  { %v268_v59 = vsel %vm121_vm2, %v246_v49, %v267_v53 }
 0x1d0   :  { %v222_v43 = vpop.permute.xlu1 %221 }
 0x1d1   :  { %v250_v50 = vrot.slane %v222_v43, %v1258_v30 }
 0x1d3   :  { %v269_v61 = vsel %vm123_vm3, %v250_v50, %v268_v59 }
 0x1d4   :  { %v225_v44 = vpop.permute.xlu1 %224 }
 0x1d5   :  { %v254_v51 = vrot.slane %v225_v44, %v1258_v30 }
 0x1d7   :  { %v270_v63 = vsel %vm125_vm4, %v254_v51, %v269_v61 }
 0x1d8   :  { %v228_v46 = vpop.permute.xlu1 %227 }
 0x1d9   :  { %v258_v58 = vrot.slane %v228_v46, %v1258_v30 }
 0x1db   :  { %v271_v3 = vsel %vm127_vm5, %v258_v58, %v270_v63 }
 0x1dc   :  { %v231_v52 = vpop.permute.xlu1 %230 }
 0x1dd   :  { %v262_v60 = vrot.slane %v231_v52, %v1258_v30 }
 0x1df   :  { %v272_v7 = vsel %vm129_vm6, %v262_v60, %v271_v3 }
 0x1e0   :  { %v234_v1 = vpop.permute.xlu1 %233 }
 0x1e1   :  { %v266_v4 = vrot.slane %v234_v1, %v1258_v30 }
 0x1e3   :  { %v273_v8 = vsel %vm131_vm7, %v266_v4, %v272_v7 }
 0x1e4   :  { %v275_v12 = vsel %vm134_vm8, %v273_v8, 0.0 }
 0x1e5   :  { %276 = vadd.xlane.f32.xlu1 %v275_v12 }
 0x26e   :  { %v277_v13 = vpop.xlane.xlu1 %276 }
 0x26f   :  { %1121 = vrcp.f32 %v277_v13 }
 0x27c   :  { %v1122_v14 = vpop.eup %1121 }
 0x27d   :  { %v283_v16 = vrot.slane %v1122_v14, %v141_v54  ;;  %v287_v20 = vrot.slane %v1122_v14, %v145_v55  ;;  %v291_v24 = vrot.slane %v1122_v14, %v149_v56  ;;  %v295_v55 = vrot.slane %v1122_v14, %v153_v57 }
 0x27e   :  { %v299_v0 = vrot.slane %v1122_v14, %v157_v62  ;;  %v303_v5 = vrot.slane %v1122_v14, %v161_v11  ;;  %v307_v28 = vrot.slane %v1122_v14, %v165_v15  ;;  %v311_v57 = vrot.slane %v1122_v14, %v169_v21 }
 0x27f   :  { %v320_v19 = vmul.f32 %v1106_v29, %v283_v16  ;;  %v321_v23 = vmul.f32 %v1108_v31, %v287_v20  ;;  %v322_v54 = vmul.f32 %v1110_v34, %v291_v24  ;;  %v323_v56 = vmul.f32 %v1112_v36, %v295_v55 }
 0x280   :  { %v324_v25 = vmul.f32 %v1114_v37, %v299_v0  ;;  %v325_v26 = vmul.f32 %v1116_v38, %v303_v5  ;;  %v326_v29 = vmul.f32 %v1118_v39, %v307_v28  ;;  %v327_v31 = vmul.f32 %v1120_v40, %v311_v57 }
 0x281   :  { %330 = vperm.xlu0 %1104, %v320_v19  }
 0x285   :  { %410 = vperm.xlu0 %1104, %v321_v23  }
 0x289   :  { %490 = vperm.xlu0 %1104, %v322_v54  }
 0x28d   :  { %570 = vperm.xlu0 %1104, %v323_v56  }
 0x291   :  { %650 = vperm.xlu0 %1104, %v324_v25  }
 0x295   :  { %730 = vperm.xlu0 %1104, %v325_v26  }
 0x299   :  { %810 = vperm.xlu0 %1104, %v326_v29  }
 0x29d   :  { %890 = vperm.xlu0 %1104, %v327_v31  }
 0x2fc   :  { %v331_v32 = vpop.permute.xlu0 %330 }
 0x2fd   :  { %v335_v62 = vrot.slane %v331_v32, %v1258_v30 }
 0x2ff   :  { %1058 = vmatmul.mubr.msk.f32.vlgmr.msra.gmra.mxu0 %vm134_vm8, %v335_v62 }
 0x300   :  { %v411_v33 = vpop.permute.xlu0 %410  ;;  %1066 = vmatpush3.msra.mxu0 %v1225_v2  ;;  %1067 = vmatprep.mubr.msk.f32.mxu0 %vm1194_vm9, %v1193_v22 }
 0x301   :  { %v415_v11 = vrot.slane %v411_v33, %v1258_v30  ;;  %1075 = vmatprep.subr.mxu0 %v1193_v22 }
 0x303   :  { %1063 = vmatmul.mubr.msk.f32.vlgmr.msra.gmra.mxu1 %vm134_vm8, %v415_v11  ;;  %v992_v36 = vsel %vm119_vm1, %v415_v11, %v335_v62 }
 0x304   :  { %v491_v27 = vpop.permute.xlu0 %490  ;;  %1071 = vmatpush3.msra.mxu1 %v1231_v6  ;;  %1072 = vmatprep.mubr.msk.f32.mxu1 %vm1194_vm9, %v1193_v22 }
 0x305   :  { %v495_v15 = vrot.slane %v491_v27, %v1258_v30  ;;  %1080 = vmatprep.subr.mxu1 %v1193_v22 }
 0x307   :  { %1068 = vmatmul.mubr.msk.f32.vlgmr.msra.gmra.mxu0 %vm134_vm8, %v495_v15  ;;  %v993_v38 = vsel %vm121_vm2, %v495_v15, %v992_v36 }
 0x308   :  { %v571_v2 = vpop.permute.xlu0 %570  ;;  %1076 = vmatpush3.msra.mxu0 %v1235_v9  ;;  %1077 = vmatprep.mubr.msk.f32.mxu0 %vm1194_vm9, %v1193_v22 }
 0x309   :  { %v575_v21 = vrot.slane %v571_v2, %v1258_v30  ;;  %1085 = vmatprep.subr.mxu0 %v1193_v22 }
 0x30b   :  { %1073 = vmatmul.mubr.msk.f32.vlgmr.msra.gmra.mxu1 %vm134_vm8, %v575_v21 }
 0x30c   :  { %v651_v6 = vpop.permute.xlu0 %650  ;;  %1081 = vmatpush3.msra.mxu1 %v1237_v10  ;;  %1082 = vmatprep.mubr.msk.f32.mxu1 %vm1194_vm9, %v1193_v22 }
 0x30d   :  { %v655_v34 = vrot.slane %v651_v6, %v1258_v30  ;;  %1090 = vmatprep.subr.mxu1 %v1193_v22 }
 0x30f   :  { %1078 = vmatmul.mubr.msk.f32.vlgmr.msra.gmra.mxu0 %vm134_vm8, %v655_v34 }
 0x310   :  { %v731_v9 = vpop.permute.xlu0 %730  ;;  %1086 = vmatpush3.msra.mxu0 %v1245_v17  ;;  %1087 = vmatprep.mubr.msk.f32.mxu0 %vm1194_vm9, %v1193_v22  ;;  %v994_v17 = vsel %vm123_vm3, %v575_v21, %v993_v38 }
 0x311   :  { %v735_v35 = vrot.slane %v731_v9, %v1258_v30  ;;  %v995_v39 = vsel %vm125_vm4, %v655_v34, %v994_v17 }
 0x313   :  { %1083 = vmatmul.mubr.msk.f32.vlgmr.msra.gmra.mxu1 %vm134_vm8, %v735_v35  ;;  %v996_v41 = vsel %vm127_vm5, %v735_v35, %v995_v39 }
 0x314   :  { %v811_v10 = vpop.permute.xlu0 %810  ;;  %1091 = vmatpush3.msra.mxu1 %v1247_v18  ;;  %1092 = vmatprep.mubr.msk.f32.mxu1 %vm1194_vm9, %v1193_v22 }
 0x315   :  { %v815_v37 = vrot.slane %v811_v10, %v1258_v30 }
 0x317   :  { %1088 = vmatmul.mubr.msk.f32.vlgmr.msra.gmra.mxu0 %vm134_vm8, %v815_v37  ;;  %v997_v42 = vsel %vm129_vm6, %v815_v37, %v996_v41 }
 0x318   :  { %v891_v40 = vpop.permute.xlu0 %890 }
 0x319   :  { %v895_v18 = vrot.slane %v891_v40, %v1258_v30 }
 0x31b   :  { %1093 = vmatmul.mubr.msk.f32.vlgmr.msra.gmra.mxu1 %vm134_vm8, %v895_v18  ;;  %v998_v43 = vsel %vm131_vm7, %v895_v18, %v997_v42 }
 0x31c   :  { %1000 = vst.msk [vmem:[#allocation6] sm:$0xff] %vm134_vm8, %v998_v43 }
 0x31d   :  { %1154 = shalt.err (!%p1151_p9)
}
 0x31e   :  { %1020 = dma.vmem_to_hbm [thread:$0]  %s1018_s1, 128, %s1405_s3, [#allocation7]  }
 0x31f   :  { %s1196_s3 = smov [#allocation5]  }
 0x320   :  { %s1007_s24 = sshll.u32 %s1196_s3, 4  ;;  %s1008_s24 = int_to_ptr.vmem [resolvable:$true] %s1007_s24 }
 0x321   :  { %s1163_s25 = scalar_lea.vmem %s1008_s24, 128  ;;  %p1168_p11 = scmp.lt.s32.totalorder %s1008_s24, %s1008_s24 }
 0x322   :  { %p1164_p10 = scmp.ne.s32.totalorder %s1008_s24, %s1163_s25  ;;  %p1169_p12 = scmp.lt.s32.totalorder %s1163_s25, %s1163_s25 }
 0x324   :  { %p1170_p13 = por %p1169_p12, %p1168_p11 }
 0x326   :  { %p1171_p0 = pnand %p1170_p13, %p1164_p10 }
 0x3bf   :  { %v404_v30 = vpop.f32.mrf.mxu0 }
 0x3c1   :  { %v1059_v44 = vpop.f32.mrf.mxu0 }
 0x3c3   :  { %v484_v45 = vpop.f32.mrf.mxu1 }
 0x3c4   :  { %v976_v58 = vrot.slane %v484_v45, 7 }
 0x3c5   :  { %v1064_v46 = vpop.f32.mrf.mxu1 }
 0x3c6   :  { %v977_v3 = vsel %vm119_vm1, %v976_v58, %v404_v30 }
 0x3c7   :  { %v564_v47 = vpop.f32.mrf.mxu0 }
 0x3c8   :  { %v978_v59 = vrot.slane %v564_v47, 6 }
 0x3c9   :  { %v1069_v48 = vpop.f32.mrf.mxu0 }
 0x3ca   :  { %v979_v7 = vsel %vm121_vm2, %v978_v59, %v977_v3 }
 0x3cb   :  { %v644_v49 = vpop.f32.mrf.mxu1 }
 0x3cc   :  { %v980_v61 = vrot.slane %v644_v49, 5 }
 0x3cd   :  { %v1074_v50 = vpop.f32.mrf.mxu1 }
 0x3ce   :  { %v981_v13 = vsel %vm123_vm3, %v980_v61, %v979_v7 }
 0x3cf   :  { %v724_v51 = vpop.f32.mrf.mxu0 }
 0x3d0   :  { %v982_v63 = vrot.slane %v724_v51, 4 }
 0x3d1   :  { %v1079_v52 = vpop.f32.mrf.mxu0 }
 0x3d2   :  { %v983_v14 = vsel %vm125_vm4, %v982_v63, %v981_v13 }
 0x3d3   :  { %v804_v53 = vpop.f32.mrf.mxu1 }
 0x3d4   :  { %v984_v4 = vrot.slane %v804_v53, 3 }
 0x3d5   :  { %v1084_v60 = vpop.f32.mrf.mxu1 }
 0x3d6   :  { %v985_v19 = vsel %vm127_vm5, %v984_v4, %v983_v14 }
 0x3d7   :  { %v884_v1 = vpop.f32.mrf.mxu0 }
 0x3d8   :  { %v986_v8 = vrot.slane %v884_v1, 2 }
 0x3d9   :  { %v1089_v12 = vpop.f32.mrf.mxu0 }
 0x3da   :  { %v987_v22 = vsel %vm129_vm6, %v986_v8, %v985_v19 }
 0x3db   :  { %v964_v16 = vpop.f32.mrf.mxu1 }
 0x3dc   :  { %v988_v20 = vrot.slane %v964_v16, 1 }
 0x3dd   :  { %v1094_v23 = vpop.f32.mrf.mxu1 }
 0x3de   :  { %v989_v24 = vsel %vm131_vm7, %v988_v20, %v987_v22 }
 0x3df   :  { %991 = vst.msk [vmem:[#allocation5] sm:$0xff] %vm52_vm0, %v989_v24 }
 0x3e0   :  { %1174 = shalt.err (!%p1171_p0)
}
 0x3e1   :  { %1010 = dma.vmem_to_hbm [thread:$0]  %s1008_s24, 128, %s1404_s2, [#allocation4]  }
 0x3e2   :  { %1185 = dma.done.wait [#allocation4], 128  }
 0x3e3   :  { %1186 = vsyncadd [#allocation4], 4294967168 }
 0x3e4   :  { %1187 = dma.done.wait [#allocation7], 128  }
 0x3e5   :  { %1188 = vsyncadd [#allocation7], 4294967168 }
 0x3e6   :  { %1027 = vsyncpa [#allocation3], 1 }
 0x3e7   :  { %1028 = vsyncpa [#allocation4], 1 }
 0x3e8   :  { %1029 = vsyncpa [#allocation7], 1 }

</bundles_post_ra>
